<compile_context>
chip_gen: v5e
topology: v5e:2x2
jax: 0.10.0
libtpu: 0.0.40
codegen_flags: <defaults>
</compile_context>

<pallas_src>
import functools

import jax
import jax.numpy as jnp
from jax.experimental import pallas as pl
from jax.experimental.pallas import tpu as pltpu


def _xskip_kernel(x_ref, w1_ref, b1_ref, w2_ref, b2_ref, o_ref, *, slope):
  """Fused Linear -> act -> Linear -> (+ 3*x) on one (tm, D) row tile."""
  x = x_ref[...]                                   # native dtype for the MXU

  h = jnp.dot(x, w1_ref[...], preferred_element_type=jnp.float32)
  h = h + b1_ref[...].astype(jnp.float32)
  if slope == 0.0:                                 # ReLU
    h = jnp.maximum(h, 0.0)
  elif 0.0 < slope < 1.0:                          # LeakyReLU: single mul+max
    h = jnp.maximum(h, slope * h)
  else:                                            # general slope fallback
    h = jnp.where(h > 0.0, h, slope * h)

  # Second matmul in the weights' native dtype (keeps the bf16 MXU fast path).
  y = jnp.dot(h.astype(w2_ref.dtype), w2_ref[...],
              preferred_element_type=jnp.float32)
  y = y + b2_ref[...].astype(jnp.float32)

  o_ref[...] = (y + 3.0 * x.astype(jnp.float32)).astype(o_ref.dtype)


def _pick_row_tile(m, d, itemsize):
  """Row-tile size: large enough to amortize per-step overhead, small enough to
  fit a ~24 MiB double-buffered (x, out) budget, and split into >= 2 grid steps
  whenever M permits so v7x can shard the grid across its two TensorCores."""
  if m <= 8:
    return m
  max_tm = 2048 if d <= 512 else (1024 if d <= 1024 else 512)
  bytes_per_row = 2 * d * itemsize                 # one x row + one out row
  cap = (24 << 20) // (2 * bytes_per_row)          # 2x = double buffering
  cap = max(8, (cap // 8) * 8)
  tm = max(8, min(max_tm, cap, (m // 8) * 8))
  if pl.cdiv(m, tm) < 2:                           # ensure >= 2 steps (megacore)
    tm = max(8, (((m + 1) // 2 + 7) // 8) * 8)
  return tm


@functools.partial(jax.jit, static_argnames=("activation", "slope"))
def x_skip_block(x, params, *, activation="relu", slope=0.1):
  """Forward pass of X_Skip_Block.

  x: (..., D).  params["W1"]/["W2"] are (D, D) stored TRANSPOSED relative to
  torch.nn.Linear.weight (i.e. W = weight.T), params["b1"]/["b2"] are (D,) or
  (1, D).  Semantics: Linear2(act(Linear1(x))) + 3 * x.
  """
  if activation == "relu":
    eff_slope = 0.0
  elif activation == "leaky_relu":
    eff_slope = float(slope)
  else:
    raise ValueError("activation must be 'relu' or 'leaky_relu'")

  d = x.shape[-1]
  w1, w2 = params["W1"], params["W2"]
  b1 = params["b1"].reshape(1, d)
  b2 = params["b2"].reshape(1, d)

  orig_shape = x.shape
  x2 = x.reshape(-1, d)
  m = x2.shape[0]
  itemsize = jnp.dtype(x.dtype).itemsize
  tm = _pick_row_tile(m, d, itemsize)
  grid = (pl.cdiv(m, tm),)                         # ragged M -> masked edge

  def _const_spec(shape):
    kwargs = {}
    if hasattr(pl, "Buffered"):
      # Constant index map -> never re-fetched; single-buffer to halve VMEM.
      kwargs["pipeline_mode"] = pl.Buffered(1)
    return pl.BlockSpec(shape, lambda i: (0,) * len(shape), **kwargs)

  # VMEM budget: double-buffered (x, out) row tiles + (conservatively doubled)
  # weight/bias buffers + headroom; clamped to v7x physical VMEM (64 MiB).
  nbytes = lambda a: a.size * jnp.dtype(a.dtype).itemsize
  w_bytes = nbytes(w1) + nbytes(w2) + nbytes(b1) + nbytes(b2)
  tile_bytes = 2 * 2 * tm * d * itemsize
  vmem_limit = int(min(max(2 * w_bytes + tile_bytes + (4 << 20), 32 << 20),
                       64 << 20))
  # TODO(synk): for very large D where both (D,D) weights no longer fit v7x's
  # 64 MiB VMEM, stream weight tiles over an extra grid axis instead of holding
  # both full weights resident.

  cost = pl.CostEstimate(
      flops=4 * m * d * d,                         # two (m,d)@(d,d) matmuls
      transcendentals=0,
      bytes_accessed=2 * m * d * itemsize + w_bytes)

  out = pl.pallas_call(
      functools.partial(_xskip_kernel, slope=eff_slope),
      out_shape=jax.ShapeDtypeStruct((m, d), x.dtype),
      grid=grid,
      in_specs=[
          pl.BlockSpec((tm, d), lambda i: (i, 0)),   # x row tile
          _const_spec((d, d)),                       # W1 (transposed: in, out)
          _const_spec((1, d)),                       # b1
          _const_spec((d, d)),                       # W2 (transposed: in, out)
          _const_spec((1, d)),                       # b2
      ],
      out_specs=pl.BlockSpec((tm, d), lambda i: (i, 0)),
      compiler_params=pltpu.CompilerParams(
          dimension_semantics=("parallel",),         # megacore split on v7x
          vmem_limit_bytes=vmem_limit),
      cost_estimate=cost,
  )(x2, w1, b1, w2, b2)

  return out.reshape(orig_shape)


def reference(x, params, activation="relu", slope=0.1):
  """Pure-JAX reference mirroring the PyTorch forward."""
  d = x.shape[-1]
  h = x @ params["W1"] + params["b1"].reshape(d)
  if activation == "relu":
    h = jnp.maximum(h, 0.0)
  else:
    h = jnp.where(h > 0.0, h, slope * h)
  return h @ params["W2"] + params["b2"].reshape(d) + 3.0 * x


if __name__ == "__main__":
  D = 128  # block_dim

  key = jax.random.PRNGKey(0)
  keys = jax.random.split(key, 6)
  params = {
      # Stored transposed relative to torch.nn.Linear.weight (W = weight.T).
      "W1": 0.1 * jax.random.normal(keys[0], (D, D), jnp.float32),
      "b1": 0.1 * jax.random.normal(keys[1], (D,), jnp.float32),
      "W2": 0.1 * jax.random.normal(keys[2], (D, D), jnp.float32),
      "b2": 0.1 * jax.random.normal(keys[3], (D,), jnp.float32),
  }

  # ReLU branch, 2-D input (M=64 -> tm=32, two-step parallel grid).
  x = jax.random.normal(keys[4], (64, D), jnp.float32)
  out = jax.block_until_ready(x_skip_block(x, params, activation="relu"))
  ref = reference(x, params, activation="relu")
  assert out.shape == x.shape
  assert jnp.allclose(out, ref, atol=1e-4, rtol=1e-4), float(
      jnp.max(jnp.abs(out - ref)))

  # LeakyReLU branch, 3-D ragged input (M=60 -> tm=56 + masked edge block).
  x3 = jax.random.normal(keys[5], (3, 20, D), jnp.float32)
  out3 = jax.block_until_ready(
      x_skip_block(x3, params, activation="leaky_relu", slope=0.1))
  ref3 = reference(x3, params, activation="leaky_relu", slope=0.1)
  assert out3.shape == x3.shape
  assert jnp.allclose(out3, ref3, atol=1e-4, rtol=1e-4), float(
      jnp.max(jnp.abs(out3 - ref3)))

  # bf16 fast path (native-dtype MXU operands, f32 accumulation): smoke test.
  xb = x.astype(jnp.bfloat16)
  pb = jax.tree_util.tree_map(lambda a: a.astype(jnp.bfloat16), params)
  outb = jax.block_until_ready(x_skip_block(xb, pb, activation="relu"))
  assert outb.shape == xb.shape
  assert bool(jnp.all(jnp.isfinite(outb.astype(jnp.float32))))

  print("KERNEL_OK")
</pallas_src>

<mosaic_0001>
module attributes {stable_mosaic.version = 11 : i64} {
  func.func @_xskip_kernel(%arg0: i32, %arg1: memref<32x128xf32, #tpu.memory_space<vmem>>, %arg2: memref<128x128xf32, #tpu.memory_space<vmem>>, %arg3: memref<1x128xf32, #tpu.memory_space<vmem>>, %arg4: memref<128x128xf32, #tpu.memory_space<vmem>>, %arg5: memref<1x128xf32, #tpu.memory_space<vmem>>, %arg6: memref<32x128xf32, #tpu.memory_space<vmem>>) attributes {dimension_semantics = [#tpu.dimension_semantics<parallel>], iteration_bounds = array<i64: 2>, scalar_prefetch = 0 : i64, scratch_operands = 0 : i64, tpu.core_type = #tpu.core_type<tc>, window_params = [{transform_indices = @transform_0, window_bounds = array<i64: 32, 128>}, {pipeline_mode = #tpu.pipeline_mode<synchronous>, transform_indices = @transform_1, window_bounds = array<i64: 128, 128>}, {pipeline_mode = #tpu.pipeline_mode<synchronous>, transform_indices = @transform_2, window_bounds = array<i64: 1, 128>}, {pipeline_mode = #tpu.pipeline_mode<synchronous>, transform_indices = @transform_3, window_bounds = array<i64: 128, 128>}, {pipeline_mode = #tpu.pipeline_mode<synchronous>, transform_indices = @transform_4, window_bounds = array<i64: 1, 128>}, {transform_indices = @transform_5, window_bounds = array<i64: 32, 128>}]} {
    %c0 = arith.constant 0 : index
    %c0_0 = arith.constant 0 : index
    %0 = vector.load %arg1[%c0, %c0_0] : memref<32x128xf32, #tpu.memory_space<vmem>>, vector<32x128xf32>
    %c0_1 = arith.constant 0 : index
    %c0_2 = arith.constant 0 : index
    %1 = vector.load %arg2[%c0_1, %c0_2] : memref<128x128xf32, #tpu.memory_space<vmem>>, vector<128x128xf32>
    %cst = arith.constant dense<0.000000e+00> : vector<32x128xf32>
    %2 = tpu.matmul %0, %1, %cst {dimension_numbers = #tpu.dot_dimension_numbers<[1], [0], [0], [1], [0, 0, 1, 1], [], []>} : vector<32x128xf32>, vector<128x128xf32>, vector<32x128xf32> -> vector<32x128xf32>
    %c0_3 = arith.constant 0 : index
    %c0_4 = arith.constant 0 : index
    %3 = vector.load %arg3[%c0_3, %c0_4] : memref<1x128xf32, #tpu.memory_space<vmem>>, vector<1x128xf32>
    %4 = vector.broadcast %3 : vector<1x128xf32> to vector<32x128xf32>
    %5 = arith.addf %2, %4 : vector<32x128xf32>
    %cst_5 = arith.constant 0.000000e+00 : f32
    %6 = vector.broadcast %cst_5 : f32 to vector<32x128xf32>
    %7 = arith.maximumf %5, %6 : vector<32x128xf32>
    %c0_6 = arith.constant 0 : index
    %c0_7 = arith.constant 0 : index
    %8 = vector.load %arg4[%c0_6, %c0_7] : memref<128x128xf32, #tpu.memory_space<vmem>>, vector<128x128xf32>
    %cst_8 = arith.constant dense<0.000000e+00> : vector<32x128xf32>
    %9 = tpu.matmul %7, %8, %cst_8 {dimension_numbers = #tpu.dot_dimension_numbers<[1], [0], [0], [1], [0, 0, 1, 1], [], []>} : vector<32x128xf32>, vector<128x128xf32>, vector<32x128xf32> -> vector<32x128xf32>
    %c0_9 = arith.constant 0 : index
    %c0_10 = arith.constant 0 : index
    %10 = vector.load %arg5[%c0_9, %c0_10] : memref<1x128xf32, #tpu.memory_space<vmem>>, vector<1x128xf32>
    %11 = vector.broadcast %10 : vector<1x128xf32> to vector<32x128xf32>
    %12 = arith.addf %9, %11 : vector<32x128xf32>
    %cst_11 = arith.constant 3.000000e+00 : f32
    %13 = vector.broadcast %cst_11 : f32 to vector<32x128xf32>
    %14 = arith.mulf %13, %0 : vector<32x128xf32>
    %15 = arith.addf %12, %14 : vector<32x128xf32>
    %c0_12 = arith.constant 0 : index
    %c0_13 = arith.constant 0 : index
    %16 = vector.load %arg6[%c0_12, %c0_13] : memref<32x128xf32, #tpu.memory_space<vmem>>, vector<32x128xf32>
    tpu.vector_store %arg6[%c0_12, %c0_13], %15 {strides = array<i32>} : memref<32x128xf32, #tpu.memory_space<vmem>>, vector<32x128xf32>,
    return
  }
  func.func @transform_0(%arg0: i32) -> (i32, i32) {
    %c0_i32 = arith.constant 0 : i32
    %c0_i32_0 = arith.constant 0 : i32
    return %arg0, %c0_i32 : i32, i32
  }
  func.func @transform_1(%arg0: i32) -> (i32, i32) {
    %c0_i32 = arith.constant 0 : i32
    %c0_i32_0 = arith.constant 0 : i32
    %c0_i32_1 = arith.constant 0 : i32
    return %c0_i32, %c0_i32_0 : i32, i32
  }
  func.func @transform_2(%arg0: i32) -> (i32, i32) {
    %c0_i32 = arith.constant 0 : i32
    %c0_i32_0 = arith.constant 0 : i32
    %c0_i32_1 = arith.constant 0 : i32
    return %c0_i32, %c0_i32_0 : i32, i32
  }
  func.func @transform_3(%arg0: i32) -> (i32, i32) {
    %c0_i32 = arith.constant 0 : i32
    %c0_i32_0 = arith.constant 0 : i32
    %c0_i32_1 = arith.constant 0 : i32
    return %c0_i32, %c0_i32_0 : i32, i32
  }
  func.func @transform_4(%arg0: i32) -> (i32, i32) {
    %c0_i32 = arith.constant 0 : i32
    %c0_i32_0 = arith.constant 0 : i32
    %c0_i32_1 = arith.constant 0 : i32
    return %c0_i32, %c0_i32_0 : i32, i32
  }
  func.func @transform_5(%arg0: i32) -> (i32, i32) {
    %c0_i32 = arith.constant 0 : i32
    %c0_i32_0 = arith.constant 0 : i32
    return %arg0, %c0_i32 : i32, i32
  }
}

</mosaic_0001>

<bundles_post_ra>
// kernel: x_skip_block.1
= control target key start
LH: loop header
LB: loop body
LE: loop exit
PB: predicated region body
PF: predicated region fallthrough
CT: control target
= control target key end

     0   :  { %10 = vsyncpa [#allocation3], 0  ;;  %s995_s0 = inlined_call_operand.hbm [shape: f32[64,128], index: 0, kind: input, shape index: {}]   ;;  %s996_s1 = inlined_call_operand.hbm [shape: f32[128,128], index: 1, kind: input, shape index: {}]   ;;  %s997_s2 = inlined_call_operand.vmem [shape: f32[1,128], index: 2, kind: input, shape index: {}]   ;;  %s998_s3 = inlined_call_operand.hbm [shape: f32[128,128], index: 3, kind: input, shape index: {}]   ;;  %s999_s4 = inlined_call_operand.vmem [shape: f32[1,128], index: 4, kind: input, shape index: {}]   ;;  %s1000_s5 = inlined_call_operand.hbm [shape: f32[64,128], index: 5, kind: output, shape index: {}]  }
   0x1   :  { %12 = vsyncpa [#allocation3 + $0x1], 0 }
   0x2   :  { %13 = vsyncpa [#allocation6], 0 }
   0x3   :  { %14 = vsyncpa [#allocation4], 0 }
   0x4   :  { %16 = vsyncpa [#allocation4 + $0x1], 0  ;;  %s829_s18 = smov 0   ;;  %s831_s19 = smov 0  }
   0x5   :  { %s833_s20 = smov 0   ;;  %s835_s21 = smov 0  }
   0x6 LB: > { %s850_s22 = sadd.s32 4294967295, %s791_s21   ;;  %s506_s23 = sadd.s32 4294967294, %s791_s21   ;;  %s791_s21 = sphi %s835_s21, %s1012_s21   ;;  %s787_s20 = sphi %s833_s20, %s1011_s20   ;;  %s783_s19 = sphi %s831_s19, %s1010_s19   ;;  %s779_s18 = sphi %s829_s18, %s1009_s18  }
   0x7   : > { %p42_p0 = scmp.ne.s32.totalorder %s783_s19, %s779_s18  ;;  %p43_p1 = scmp.eq.s32.totalorder %s850_s22, 0 }
   0x8   : > { %p150_p2 = scmp.eq.s32.totalorder %s850_s22, 1  ;;  %p156_p3 = scmp.eq.s32.totalorder %s506_s23, 1 }
   0x9   : > { %p859_p4 = por %p43_p1, %p42_p0  ;;  %p507_p5 = scmp.ge.s32.totalorder %s791_s21, 1 }
   0xa   : > { %p864_p6 = por %p156_p3, %p42_p0  ;;  %p163_p7 = scmp.lt.s32.totalorder %s791_s21, 3 }
   0xb   : > { %s174_s28 = sshll.u32 %s996_s1, 4  ;;  %s793_s30 = smov [#allocation5]   ;;  %s175_s28 = int_to_ptr.hbm [resolvable:$true] %s174_s28 }
   0xc   : > { %p872_p8 = pnand %p507_p5, %p163_p7  ;;  %s176_s6 = sshll.u32 %s793_s30, 4  ;;  %s177_s6 = int_to_ptr.vmem [resolvable:$true] %s176_s6 }
   0xd   : > { %s191_s9 = sshll.u32 %s998_s3, 4  ;;  %s1001_s10 = smov 128   ;;  %s192_s9 = int_to_ptr.hbm [resolvable:$true] %s191_s9 }
   0xe   : > { %p570_p9 = pneg %p872_p8  ;;  %s795_s11 = smov 8  }
   0xf   : > { %s796_s12 = smov [#allocation7]   ;;  %s891_s14 = sadd.s32 1, %s791_s21  }
  0x10   : > { %p571_p10 = pnand %p570_p9, %p43_p1  ;;  %s193_s13 = sshll.u32 %s796_s12, 4  ;;  %s194_s13 = int_to_ptr.vmem [resolvable:$true] %s193_s13 }
  0x11   : > { %s29_s15 = sadd.s32 1, %s787_s20  ;;  %s26_s16 = ssub.s32 %s791_s21, %s891_s14 }
  0x12   : > { %573 = dma.hbm_to_vmem [thread:$0]  (!%p571_p10), %s175_s28, 2048, %s177_s6, [#allocation6], %s1001_s10, %s1001_s10, %s795_s11  }
  0x13   : > { %576 = dma.hbm_to_vmem [thread:$0]  (!%p571_p10), %s192_s9, 2048, %s194_s13, [#allocation6], %s1001_s10, %s1001_s10, %s795_s11  }
  0x14   : > { %p36_p12 = scmp.ne.s32.totalorder %s787_s20, %s783_s19  ;;  %p27_p13 = scmp.eq.s32.totalorder %s26_s16, 0 }
  0x15   : > { %p37_p0 = scmp.eq.s32.totalorder %s791_s21, 0  ;;  %p587_p5 = scmp.lt.s32.totalorder %s791_s21, 2 }
  0x16   : > { %p901_p3 = por %p150_p2, %p36_p12  ;;  %s210_s26 = sand.u32 1, %s787_s20  }
  0x17   : > { %s907_s23 = scalar_select %p27_p13, %s787_s20, %s29_s15  }
  0x18   : > { %p38_p7 = por %p37_p0, %p36_p12  ;;  %s511_s27 = sshll.u32 %s210_s26, 5 }
  0x19   : > { %s524_s28 = sshll.u32 %s791_s21, 5  ;;  %s214_s8 = scalar_lea.vmem [#allocation2], %s511_s27 }
  0x1a   : > { %s219_s7 = scalar_lea.hbm %s995_s0, %s524_s28  ;;  %s222_s9 = sshll.u32 %s214_s8, 4  ;;  %s223_s9 = int_to_ptr.vmem [resolvable:$true] %s222_s9 }
  0x1b   : > { %s220_s12 = sshll.u32 %s219_s7, 4  ;;  %p914_p2 = pnand %p587_p5, %p38_p7  ;;  %s221_s12 = int_to_ptr.hbm [resolvable:$true] %s220_s12 }
  0x1c   : > { %s211_s15 = scalar_lea.sflag [#allocation3], %s210_s26  ;;  %s691_s16 = sshra.s32 %s221_s12, 4  ;;  %s692_s16 = int_to_ptr.hbm [resolvable:$true] %s691_s16 }
  0x1d   : > { %s693_s10 = scalar_lea.hbm %s692_s16, 32  ;;  %p695_p10 = pneg %p914_p2 }
  0x1e   : > { %p694_p9 = scmp.ne.s32.totalorder %s692_s16, %s693_s10  ;;  %s698_s30 = scalar_lea.hbm %s995_s0, 64 }
  0x1f   : > { %p699_p0 = scmp.lt.s32.totalorder %s692_s16, %s995_s0  ;;  %p700_p5 = scmp.lt.s32.totalorder %s698_s30, %s693_s10 }
  0x20   : > { %p696_p12 = pnand %p695_p10, %p694_p9 }
  0x21   : > { %p701_p7 = por %p700_p5, %p699_p0 }
  0x22   : > { %p697_p13 = pneg %p696_p12 }
  0x24   : > { %p702_p11 = pnand %p701_p7, %p697_p13 }
  0x26   : > { %705 = shalt.err (!%p702_p11)
}
  0x27   : > { %s1007_s26 = smov 128   ;;  %234 = sbr.rel (%p872_p8) target bundleno = 363 (0x16b), region = 40 }
  0x28   : > { %580 = dma.hbm_to_vmem [thread:$0]  (!%p914_p2), %s221_s12, 512, %s223_s9, %s211_s15, %s1007_s26, %s1007_s26, %s795_s11  }
  0x29   : > { %s934_s8 = sand.u32 (!%p872_p8), 1, %s783_s19  }
  0x2a   : > { %s515_s10 = sshll.u32 (!%p872_p8), %s934_s8, 5  ;;  %s237_s16 = scalar_lea.sflag (!%p872_p8), [#allocation3], %s934_s8 }
  0x2b   : > { %s940_s28 = scalar_lea.vmem (!%p872_p8), [#allocation2], %s515_s10 }
  0x2c   : > { %766 = dma.done.wait (%p859_p4), %s237_s16, 512  }
  0x2d   : > { %768 = vsyncadd (%p859_p4), %s237_s16, 4294966784 }
  0x2e   : > { %770 = dma.done.wait (%p43_p1), [#allocation6], 4096  }
  0x2f   : > { %772 = vsyncadd (%p43_p1), [#allocation6], 4294963200  ;;  %v299_v0 = vld [vmem:[#allocation5 + $0x78] sm:$0xff]  ;;  %v298_v1 = vld [vmem:[#allocation5 + $0x70] sm:$0xff]  ;;  %s277_s12 = scalar_lea.vmem [#allocation8], %s515_s10  ;;  %s525_s13 = sshll.u32 %s850_s22, 5 }
  0x30   : > { %526 = vmatpush.msra.mxu2 %v299_v0  ;;  %304 = vmatpush.msra.mxu0 %v299_v0  ;;  %v297_v2 = vld [vmem:[#allocation5 + $0x68] sm:$0xff]  ;;  %v296_v3 = vld [vmem:[#allocation5 + $0x60] sm:$0xff]  ;;  %v295_v4 = vld [vmem:[#allocation5 + $0x58] sm:$0xff]  ;;  %s410_s30 = scalar_lea.hbm %s1000_s5, %s525_s13  ;;  %s411_s6 = sshll.u32 %s277_s12, 4  ;;  %s412_s6 = int_to_ptr.vmem [resolvable:$true] %s411_s6 }
  0x31   : > { %v294_v5 = vld [vmem:[#allocation5 + $0x50] sm:$0xff]  ;;  %v352_v6 = vld [vmem:[#allocation7 + $0x78] sm:$0xff]  ;;  %v293_v8 = vld [vmem:[#allocation5 + $0x48] sm:$0xff]  ;;  %s413_s7 = sshll.u32 %s410_s30, 4  ;;  %s399_s26 = scalar_lea.sflag [#allocation4], %s934_s8  ;;  %s414_s7 = int_to_ptr.hbm [resolvable:$true] %s413_s7 }
  0x32   : > { %527 = vmatpush.msra.mxu2 %v298_v1  ;;  %305 = vmatpush.msra.mxu0 %v298_v1  ;;  %v351_v7 = vld [vmem:[#allocation7 + $0x70] sm:$0xff]  ;;  %v350_v9 = vld [vmem:[#allocation7 + $0x68] sm:$0xff]  ;;  %v292_v10 = vld [vmem:[#allocation5 + $0x40] sm:$0xff]  ;;  %s735_s10 = sshra.s32 %s414_s7, 4  ;;  %s741_s24 = scalar_lea.hbm %s1000_s5, 64  ;;  %s736_s10 = int_to_ptr.hbm [resolvable:$true] %s735_s10 }
  0x33   : > { %542 = vmatpush.msra.mxu3 %v352_v6  ;;  %357 = vmatpush.msra.mxu1 %v352_v6  ;;  %v349_v11 = vld [vmem:[#allocation7 + $0x60] sm:$0xff]  ;;  %v291_v12 = vld [vmem:[#allocation5 + $0x38] sm:$0xff]  ;;  %v290_v14 = vld [vmem:[#allocation5 + $0x30] sm:$0xff]  ;;  %s737_s22 = scalar_lea.hbm %s736_s10, 32  ;;  %p742_p11 = scmp.lt.s32.totalorder %s736_s10, %s1000_s5 }
  0x34   : > { %528 = vmatpush.msra.mxu2 %v297_v2  ;;  %306 = vmatpush.msra.mxu0 %v297_v2  ;;  %v348_v13 = vld [vmem:[#allocation7 + $0x58] sm:$0xff]  ;;  %v347_v15 = vld [vmem:[#allocation7 + $0x50] sm:$0xff]  ;;  %v289_v16 = vld [vmem:[#allocation5 + $0x28] sm:$0xff]  ;;  %p738_p1 = scmp.ne.s32.totalorder %s736_s10, %s737_s22  ;;  %p743_p2 = scmp.lt.s32.totalorder %s741_s24, %s737_s22 }
  0x35   : > { %543 = vmatpush.msra.mxu3 %v351_v7  ;;  %358 = vmatpush.msra.mxu1 %v351_v7  ;;  %v346_v17 = vld [vmem:[#allocation7 + $0x48] sm:$0xff]  ;;  %v288_v18 = vld [vmem:[#allocation5 + $0x20] sm:$0xff]  ;;  %v287_v20 = vld [vmem:[#allocation5 + $0x18] sm:$0xff] }
  0x36   : > { %529 = vmatpush.msra.mxu2 %v296_v3  ;;  %307 = vmatpush.msra.mxu0 %v296_v3  ;;  %v345_v19 = vld [vmem:[#allocation7 + $0x40] sm:$0xff]  ;;  %v344_v21 = vld [vmem:[#allocation7 + $0x38] sm:$0xff]  ;;  %v286_v22 = vld [vmem:[#allocation5 + $0x10] sm:$0xff]  ;;  %p739_p4 = pnand %p738_p1, %p901_p3  ;;  %p744_p9 = por %p743_p2, %p742_p11 }
  0x37   : > { %544 = vmatpush.msra.mxu3 %v350_v9  ;;  %359 = vmatpush.msra.mxu1 %v350_v9  ;;  %v343_v23 = vld [vmem:[#allocation7 + $0x30] sm:$0xff]  ;;  %v285_v24 = vld [vmem:[#allocation5 + $0x8] sm:$0xff]  ;;  %v284_v26 = vld [vmem:[#allocation5] sm:$0xff] }
  0x38   : > { %530 = vmatpush.msra.mxu2 %v295_v4  ;;  %308 = vmatpush.msra.mxu0 %v295_v4  ;;  %v342_v25 = vld [vmem:[#allocation7 + $0x28] sm:$0xff]  ;;  %v282_v27 = vld [vmem:[%s940_s28 + $0x10] sm:$0xff]  ;;  %v280_v28 = vld [vmem:[%s940_s28] sm:$0xff]  ;;  %p740_p8 = pneg %p739_p4 }
  0x39   : > { %545 = vmatpush.msra.mxu3 %v349_v11  ;;  %360 = vmatpush.msra.mxu1 %v349_v11  ;;  %v341_v29 = vld [vmem:[#allocation7 + $0x20] sm:$0xff]  ;;  %v340_v30 = vld [vmem:[#allocation7 + $0x18] sm:$0xff]  ;;  %v281_v32 = vld [vmem:[%s940_s28 + $0x8] sm:$0xff]  ;;  %v386_v50 = vmul.f32 3.0, %v280_v28  ;;  %v388_v57 = vmul.f32 3.0, %v282_v27 }
  0x3a   : > { %531 = vmatpush.msra.mxu2 %v294_v5  ;;  %309 = vmatpush.msra.mxu0 %v294_v5  ;;  %v283_v31 = vld [vmem:[%s940_s28 + $0x18] sm:$0xff]  ;;  %v339_v33 = vld [vmem:[#allocation7 + $0x10] sm:$0xff]  ;;  %v338_v34 = vld [vmem:[#allocation7 + $0x8] sm:$0xff]  ;;  %v387_v54 = vmul.f32 3.0, %v281_v32  ;;  %p745_p10 = pnand %p744_p9, %p740_p8 }
  0x3b   : > { %546 = vmatpush.msra.mxu3 %v348_v13  ;;  %361 = vmatpush.msra.mxu1 %v348_v13  ;;  %v337_v35 = vld [vmem:[#allocation7] sm:$0xff]  ;;  %v389_v62 = vmul.f32 3.0, %v283_v31 }
  0x3c   : > { %532 = vmatpush.msra.mxu2 %v293_v8  ;;  %310 = vmatpush.msra.mxu0 %v293_v8  ;;  %v629_v36 = vld [vmem:[%s997_s2] ss:$0 sm:$0xff] }
  0x3d   : > { %547 = vmatpush.msra.mxu3 %v347_v15  ;;  %362 = vmatpush.msra.mxu1 %v347_v15  ;;  %v630_v49 = vld [vmem:[%s999_s4] ss:$0 sm:$0xff] }
  0x3e   : > { %533 = vmatpush.msra.mxu2 %v292_v10  ;;  %311 = vmatpush.msra.mxu0 %v292_v10 }
  0x3f   : > { %548 = vmatpush.msra.mxu3 %v346_v17  ;;  %363 = vmatpush.msra.mxu1 %v346_v17 }
  0x40   : > { %534 = vmatpush.msra.mxu2 %v291_v12  ;;  %312 = vmatpush.msra.mxu0 %v291_v12 }
  0x41   : > { %549 = vmatpush.msra.mxu3 %v345_v19  ;;  %364 = vmatpush.msra.mxu1 %v345_v19 }
  0x42   : > { %535 = vmatpush.msra.mxu2 %v290_v14  ;;  %313 = vmatpush.msra.mxu0 %v290_v14 }
  0x43   : > { %550 = vmatpush.msra.mxu3 %v344_v21  ;;  %365 = vmatpush.msra.mxu1 %v344_v21 }
  0x44   : > { %536 = vmatpush.msra.mxu2 %v289_v16  ;;  %314 = vmatpush.msra.mxu0 %v289_v16 }
  0x45   : > { %551 = vmatpush.msra.mxu3 %v343_v23  ;;  %366 = vmatpush.msra.mxu1 %v343_v23 }
  0x46   : > { %537 = vmatpush.msra.mxu2 %v288_v18  ;;  %315 = vmatpush.msra.mxu0 %v288_v18 }
  0x47   : > { %552 = vmatpush.msra.mxu3 %v342_v25  ;;  %367 = vmatpush.msra.mxu1 %v342_v25 }
  0x48   : > { %538 = vmatpush.msra.mxu2 %v287_v20  ;;  %316 = vmatpush.msra.mxu0 %v287_v20 }
  0x49   : > { %553 = vmatpush.msra.mxu3 %v341_v29  ;;  %368 = vmatpush.msra.mxu1 %v341_v29 }
  0x4a   : > { %539 = vmatpush.msra.mxu2 %v286_v22  ;;  %317 = vmatpush.msra.mxu0 %v286_v22 }
  0x4b   : > { %554 = vmatpush.msra.mxu3 %v340_v30  ;;  %369 = vmatpush.msra.mxu1 %v340_v30 }
  0x4c   : > { %540 = vmatpush.msra.mxu2 %v285_v24  ;;  %318 = vmatpush.msra.mxu0 %v285_v24 }
  0x4d   : > { %555 = vmatpush.msra.mxu3 %v339_v33  ;;  %370 = vmatpush.msra.mxu1 %v339_v33 }
  0x4e   : > { %541 = vmatpush.msra.mxu2 %v284_v26  ;;  %319 = vmatpush.msra.mxu0 %v284_v26 }
  0x4f   : > { %326 = vmatmul.f32.vlgmr.msra.gmra.mxu2 %v282_v27  ;;  %320 = vmatmul.f32.vlgmr.msra.gmra.mxu0 %v280_v28 }
  0x50   : > { %556 = vmatpush.msra.mxu3 %v338_v34  ;;  %371 = vmatpush.msra.mxu1 %v338_v34 }
  0x52   : > { %557 = vmatpush.msra.mxu3 %v337_v35  ;;  %372 = vmatpush.msra.mxu1 %v337_v35 }
  0x57   : > { %329 = vmatmul.f32.gmra.mxu2 %v283_v31  ;;  %323 = vmatmul.f32.gmra.mxu0 %v281_v32 }
  0xcc   : > { %v321_v37 = vpop.f32.mrf.mxu0 }
  0xcd   : > { %v322_v38 = vadd.f32 %v629_v36, %v321_v37 }
  0xcf   : > { %v333_v39 = vmax.f32 %v322_v38, 0.0 }
  0xd1   : > { %373 = vmatmul.f32.vlgmr.msra.gmra.mxu1 %v333_v39 }
  0xd2   : > { %v327_v40 = vpop.f32.mrf.mxu2 }
  0xd3   : > { %v328_v41 = vadd.f32 %v629_v36, %v327_v40 }
  0xd4   : > { %v324_v42 = vpop.f32.mrf.mxu0 }
  0xd5   : > { %v335_v43 = vmax.f32 %v328_v41, 0.0  ;;  %v325_v44 = vadd.f32 %v629_v36, %v324_v42 }
  0xd7   : > { %379 = vmatmul.f32.vlgmr.msra.gmra.mxu3 %v335_v43  ;;  %v334_v45 = vmax.f32 %v325_v44, 0.0 }
  0xd9   : > { %376 = vmatmul.f32.gmra.mxu1 %v334_v45 }
  0xda   : > { %v330_v46 = vpop.f32.mrf.mxu2 }
  0xdb   : > { %v331_v47 = vadd.f32 %v629_v36, %v330_v46 }
  0xdd   : > { %v336_v48 = vmax.f32 %v331_v47, 0.0 }
  0xdf   : > { %382 = vmatmul.f32.gmra.mxu3 %v336_v48 }
 0x14e   : > { %v374_v51 = vpop.f32.mrf.mxu1 }
 0x14f   : > { %v375_v52 = vadd.f32 %v630_v49, %v374_v51 }
 0x151   : > { %v390_v53 = vadd.f32 %v386_v50, %v375_v52 }
 0x153   : > { %394 = vst [vmem:[%s277_s12] sm:$0xff] %v390_v53 }
 0x156   : > { %v377_v55 = vpop.f32.mrf.mxu1 }
 0x157   : > { %v378_v56 = vadd.f32 %v630_v49, %v377_v55 }
 0x159   : > { %v391_v58 = vadd.f32 %v387_v54, %v378_v56 }
 0x15a   : > { %v380_v59 = vpop.f32.mrf.mxu3 }
 0x15b   : > { %v381_v60 = vadd.f32 %v630_v49, %v380_v59  ;;  %395 = vst [vmem:[%s277_s12 + $0x8] sm:$0xff] %v391_v58 }
 0x15d   : > { %v392_v61 = vadd.f32 %v388_v57, %v381_v60 }
 0x15f   : > { %396 = vst [vmem:[%s277_s12 + $0x10] sm:$0xff] %v392_v61 }
 0x162   : > { %v383_v63 = vpop.f32.mrf.mxu3 }
 0x163   : > { %v384_v0 = vadd.f32 %v630_v49, %v383_v63 }
 0x165   : > { %v393_v1 = vadd.f32 %v389_v62, %v384_v0 }
 0x167   : > { %397 = vst [vmem:[%s277_s12 + $0x18] sm:$0xff] %v393_v1 }
 0x168   : > { %748 = shalt.err (!%p745_p10)
}
 0x169   : > { %s797_s8 = smov 128   ;;  %s798_s9 = smov 8  }
 0x16a   : > { %568 = dma.vmem_to_hbm [thread:$0]  (%p901_p3), %s412_s6, 512, %s414_s7, %s399_s26, %s797_s8, %s797_s8, %s798_s9  }
 0x16b PF: > { %s428_s12 = sand.u32 1, %s779_s18   ;;  %p1008_p12 = scmp.ge.s32.totalorder %s791_s21, 2 }
 0x16c   : > { %s429_s13 = scalar_lea.sflag [#allocation4], %s428_s12 }
 0x16d   : > { %p582_p13 = pnand %p1008_p12, %p864_p6 }
 0x16f   : > { %p583_p0 = pneg %p582_p13 }
 0x171   : > { %774 = dma.done.wait (%p583_p0), %s429_s13, 512  }
 0x172   : > { %776 = vsyncadd (%p583_p0), %s429_s13, 4294966784  ;;  %p19_p5 = scmp.ge.s32.totalorder %s891_s14, 4   ;;  %s1009_s18 = smov %s783_s19 }
 0x173   : > { %s1010_s19 = smov %s787_s20  ;;  %s1011_s20 = smov %s907_s23 }
 0x174   : > { %s1012_s21 = smov %s891_s14  ;;  %21 = sbr.rel (!%p19_p5) target bundleno = 6 (0x6), region = 93 }
 0x179   :  { %435 = vsyncpa [#allocation3], 1 }
 0x17a   :  { %437 = vsyncpa [#allocation3 + $0x1], 1 }
 0x17b   :  { %438 = vsyncpa [#allocation6], 1 }
 0x17c   :  { %439 = vsyncpa [#allocation4], 1 }
 0x17d   :  { %441 = vsyncpa [#allocation4 + $0x1], 1 }

</bundles_post_ra>
